<compile_context>
chip_gen: v5e
topology: v5e:2x2
jax: 0.10.0
libtpu: 0.0.40
codegen_flags: <defaults>
</compile_context>

<pallas_src>
import functools
import math

import jax
import jax.numpy as jnp
from jax import lax
from jax.experimental import pallas as pl
from jax.experimental.pallas import tpu as pltpu


_NEG_INF = -1e30  # finite stand-in for float('-inf'); exp() underflows to 0 exactly.
_VMEM_BUDGET = 24 * 1024 * 1024  # keep double-buffered working set v7x-safe (64 MiB VMEM)


def _pick_tile(dim: int, target: int) -> int:
    """Largest 128-multiple tile (<= target) that divides `dim`, else full extent.

    Full-extent blocks are always legal under the (8, 128) BlockSpec rule.
    """
    t = target
    while t >= 128:
        if dim >= t and dim % t == 0:
            return t
        t //= 2
    return dim
    # TODO(synk): pad/mask edge tiles instead of the full-extent fallback for
    #             pathological non-divisible dims (v7x VMEM headroom).


# ---------------------------------------------------------------------------
# Linear (nn.Linear, bias=False) kernels: y = x @ w.T with w in [out, in] layout.
# No host-side transpose -- the MXU takes the transposed operand natively.
# ---------------------------------------------------------------------------
def _matmul_kernel_fullk(x_ref, w_ref, o_ref):
    # Full reduction dim resident: no accumulator scratch, single store.
    o_ref[...] = lax.dot_general(
        x_ref[...], w_ref[...], (((1,), (1,)), ((), ())),
        preferred_element_type=jnp.float32,
    ).astype(o_ref.dtype)


def _matmul_kernel_tiledk(x_ref, w_ref, o_ref, acc_ref):
    @pl.when(pl.program_id(2) == 0)
    def _():
        acc_ref[...] = jnp.zeros_like(acc_ref)

    acc_ref[...] += lax.dot_general(
        x_ref[...], w_ref[...], (((1,), (1,)), ((), ())),
        preferred_element_type=jnp.float32,
    )

    @pl.when(pl.program_id(2) == pl.num_programs(2) - 1)
    def _():
        o_ref[...] = acc_ref[...].astype(o_ref.dtype)


def linear_no_bias(x2d, w, *, tn: int = 256, tk: int = 512,
                   vmem_budget: int = _VMEM_BUDGET):
    """x2d: [M, K]; w: [N, K] (PyTorch nn.Linear [out, in] layout). Returns x2d @ w.T."""
    M, K = x2d.shape
    N, Kw = w.shape
    assert K == Kw, (x2d.shape, w.shape)
    itemsize = jnp.dtype(x2d.dtype).itemsize
    bn = _pick_tile(N, tn)

    # Prefer a 2-D grid with the full K (reduction) dim resident per step: no
    # accumulator init/finalize, no re-DMA of the activation row-block per K step.
    bm_full = None
    for tm in (512, 256, 128):
        bm = _pick_tile(M, tm)
        if 2 * itemsize * (bm * K + bn * K + bm * bn) <= vmem_budget:
            bm_full = bm
            break

    if bm_full is not None:
        bm = bm_full
        return pl.pallas_call(
            _matmul_kernel_fullk,
            out_shape=jax.ShapeDtypeStruct((M, N), x2d.dtype),
            grid_spec=pltpu.PrefetchScalarGridSpec(
                num_scalar_prefetch=0,
                grid=(M // bm, N // bn),
                in_specs=[
                    pl.BlockSpec((bm, K), lambda i, j: (i, 0)),
                    pl.BlockSpec((bn, K), lambda i, j: (j, 0)),
                ],
                out_specs=pl.BlockSpec((bm, bn), lambda i, j: (i, j)),
            ),
            compiler_params=pltpu.CompilerParams(
                dimension_semantics=("parallel", "parallel")),
        )(x2d, w)

    # Fallback: tiled reduction with an f32 accumulator scratch.
    bm = _pick_tile(M, 256)
    bk = _pick_tile(K, tk)
    return pl.pallas_call(
        _matmul_kernel_tiledk,
        out_shape=jax.ShapeDtypeStruct((M, N), x2d.dtype),
        grid_spec=pltpu.PrefetchScalarGridSpec(
            num_scalar_prefetch=0,
            grid=(M // bm, N // bn, K // bk),
            in_specs=[
                pl.BlockSpec((bm, bk), lambda i, j, k: (i, k)),
                pl.BlockSpec((bn, bk), lambda i, j, k: (j, k)),
            ],
            out_specs=pl.BlockSpec((bm, bn), lambda i, j, k: (i, j)),
            scratch_shapes=[pltpu.VMEM((bm, bn), jnp.float32)],
        ),
        compiler_params=pltpu.CompilerParams(
            dimension_semantics=("parallel", "parallel", "arbitrary")),
    )(x2d, w)


# ---------------------------------------------------------------------------
# Flash-style attention kernel operating directly on [B, S, E] activations.
# grid = (B, Sq/tq, Sk/tkv); the KV axis is an "arbitrary" reduction with
# per-head online-softmax state in f32 VMEM scratch.  Heads are a static
# in-kernel loop (lane slices of the E dim), so no XLA head transposes and the
# q/k/v/mask blocks are DMA'd once per grid step for all heads.
# ---------------------------------------------------------------------------
def _mha_attention_kernel(*refs, n_heads, head_dim, scale, has_mask):
    if has_mask:
        q_ref, k_ref, v_ref, mask_ref = refs[:4]
        o_ref, m_sc, l_sc, acc_sc = refs[4:]
    else:
        q_ref, k_ref, v_ref = refs[:3]
        o_ref, m_sc, l_sc, acc_sc = refs[3:]

    kv_idx = pl.program_id(2)

    @pl.when(kv_idx == 0)
    def _():
        m_sc[...] = jnp.full_like(m_sc, -jnp.inf)
        l_sc[...] = jnp.zeros_like(l_sc)
        acc_sc[...] = jnp.zeros_like(acc_sc)

    # Load each block once for all heads (native dtype: bf16 inputs stay bf16
    # on the MXU; accumulation is f32 via preferred_element_type).
    q_all = q_ref[...]   # (tq, E)
    k_all = k_ref[...]   # (tkv, E)
    v_all = v_ref[...]   # (tkv, E)
    if has_mask:
        mask_block = mask_ref[...]  # (tq, tkv) int8; 0 == masked out

    for h in range(n_heads):
        lo, hi = h * head_dim, (h + 1) * head_dim
        qh = q_all[:, lo:hi]
        kh = k_all[:, lo:hi]
        vh = v_all[:, lo:hi]

        # scores[sq, sk] = sum_d q[sq, d] * k[sk, d]
        s = lax.dot_general(
            qh, kh, (((1,), (1,)), ((), ())), preferred_element_type=jnp.float32
        ) * jnp.float32(scale)
        if has_mask:
            # Finite -1e30 fill (matches the reference); fully-masked rows give a
            # uniform softmax instead of NaN, same as the pure-JAX reference.
            s = jnp.where(mask_block == 0, jnp.float32(_NEG_INF), s)

        m_prev = m_sc[h]                                     # (tq, 1)
        m_new = jnp.maximum(m_prev, jnp.max(s, axis=-1, keepdims=True))
        alpha = jnp.exp(m_prev - m_new)
        p = jnp.exp(s - m_new)
        l_sc[h] = alpha * l_sc[h] + jnp.sum(p, axis=-1, keepdims=True)
        acc_sc[h] = alpha * acc_sc[h] + jnp.dot(
            p.astype(v_ref.dtype), vh, preferred_element_type=jnp.float32
        )
        m_sc[h] = m_new

    @pl.when(kv_idx == pl.num_programs(2) - 1)
    def _():
        for h in range(n_heads):
            lo, hi = h * head_dim, (h + 1) * head_dim
            # EUP reciprocal (separate VLIW slot) instead of a full-width divide.
            inv_l = pl.reciprocal(l_sc[h], approx=True)
            o_ref[:, lo:hi] = (acc_sc[h] * inv_l).astype(o_ref.dtype)


def _attention_tiles(Sq, Sk, E, n_heads, head_dim, itemsize,
                     vmem_budget=_VMEM_BUDGET):
    """Largest (tq, tkv) candidate whose double-buffered working set fits VMEM."""
    tq = tkv = None
    for tq_t, tkv_t in ((256, 512), (256, 256), (128, 256), (128, 128)):
        tq = _pick_tile(Sq, tq_t)
        tkv = _pick_tile(Sk, tkv_t)
        blocks = 2 * itemsize * (2 * tq * E + 2 * tkv * E) + 2 * tq * tkv  # q,o,k,v,mask
        scratch = 4 * n_heads * tq * (max(head_dim, 128) + 2 * 128)        # acc,m,l (padded)
        if blocks + scratch <= vmem_budget:
            break
    return tq, tkv


def scaled_dot_product_attention(q, k, v, mask3, n_heads, embed_dim,
                                 q_col=0, k_col=0, v_col=0):
    """q: [B, Sq, cq*E]; k, v: [B, Sk, ck*E]/[B, Sk, cv*E]; mask3: [Bm, Sq, Sk] int8 or None.

    q_col/k_col/v_col select which E-wide column slab of each array to use, so a
    fused [B, S, 3E] qkv projection output is consumed in place (no split copies).
    Returns [B, Sq, E].
    """
    B, Sq, _ = q.shape
    Sk = k.shape[1]
    E = embed_dim
    Dh = E // n_heads
    scale = 1.0 / math.sqrt(Dh)
    itemsize = jnp.dtype(q.dtype).itemsize
    tq, tkv = _attention_tiles(Sq, Sk, E, n_heads, Dh, itemsize)
    grid = (B, Sq // tq, Sk // tkv)

    in_specs = [
        pl.BlockSpec((None, tq, E), lambda b, qi, ki, c=q_col: (b, qi, c)),
        pl.BlockSpec((None, tkv, E), lambda b, qi, ki, c=k_col: (b, ki, c)),
        pl.BlockSpec((None, tkv, E), lambda b, qi, ki, c=v_col: (b, ki, c)),
    ]
    operands = [q, k, v]
    has_mask = mask3 is not None
    if has_mask:
        if mask3.shape[0] == 1:
            mask_map = lambda b, qi, ki: (0, qi, ki)
        else:
            mask_map = lambda b, qi, ki: (b, qi, ki)
        in_specs.append(pl.BlockSpec((None, tq, tkv), mask_map))
        operands.append(mask3)

    kernel = functools.partial(
        _mha_attention_kernel, n_heads=n_heads, head_dim=Dh, scale=scale,
        has_mask=has_mask)

    return pl.pallas_call(
        kernel,
        out_shape=jax.ShapeDtypeStruct((B, Sq, E), q.dtype),
        grid_spec=pltpu.PrefetchScalarGridSpec(
            num_scalar_prefetch=0,
            grid=grid,
            in_specs=in_specs,
            out_specs=pl.BlockSpec((None, tq, E), lambda b, qi, ki: (b, qi, 0)),
            scratch_shapes=[
                pltpu.VMEM((n_heads, tq, 1), jnp.float32),   # running max m_i per head
                pltpu.VMEM((n_heads, tq, 1), jnp.float32),   # running denom l_i per head
                pltpu.VMEM((n_heads, tq, Dh), jnp.float32),  # output accumulator per head
            ],
        ),
        compiler_params=pltpu.CompilerParams(
            dimension_semantics=("parallel", "parallel", "arbitrary")),
    )(*operands)


# ---------------------------------------------------------------------------
# Full MultiHeadAttentionBlock forward.
# ---------------------------------------------------------------------------
def multi_head_attention_block(query, key, value, mask, w_q, w_k, w_v, w_o, n_heads):
    B, Sq, E = query.shape
    Sk = key.shape[1]
    assert E % n_heads == 0, "embed_dim must be divisible by n_heads."
    # The fused projection output is addressed in E-wide column slabs by the
    # attention BlockSpecs, which requires E to be lane-tile aligned.
    lane_ok = (E % 128 == 0)

    if (query is key) and (key is value) and lane_ok:
        # Self-attention: one projection call, activation read from HBM once.
        w_qkv = jnp.concatenate([w_q, w_k, w_v], axis=0)              # [3E, E]
        qkv = linear_no_bias(query.reshape(B * Sq, E), w_qkv)         # [B*Sq, 3E]
        qkv = qkv.reshape(B, Sq, 3 * E)
        q_in = k_in = v_in = qkv
        qc, kc, vc = 0, 1, 2
    elif (key is value) and lane_ok:
        # Cross-attention with shared K/V source: fuse the K and V projections.
        q_in = linear_no_bias(query.reshape(B * Sq, E), w_q).reshape(B, Sq, E)
        w_kv = jnp.concatenate([w_k, w_v], axis=0)                    # [2E, E]
        kv = linear_no_bias(key.reshape(B * Sk, E), w_kv).reshape(B, Sk, 2 * E)
        k_in = v_in = kv
        qc, kc, vc = 0, 0, 1
    else:
        q_in = linear_no_bias(query.reshape(B * Sq, E), w_q).reshape(B, Sq, E)
        k_in = linear_no_bias(key.reshape(B * Sk, E), w_k).reshape(B, Sk, E)
        v_in = linear_no_bias(value.reshape(B * Sk, E), w_v).reshape(B, Sk, E)
        qc = kc = vc = 0

    mask3 = None
    if mask is not None:
        m = jnp.asarray(mask)
        m = m.reshape((1,) * (4 - m.ndim) + m.shape)   # pad to [Bm, 1, Sq, Sk]-like
        assert m.shape[1] == 1, "per-head masks are not supported"
        Bm = m.shape[0]
        assert Bm in (1, B)
        # int8 mask: 4x less HBM traffic than f32; DMA'd once per (b, q, kv) block.
        mask3 = jnp.broadcast_to(m, (Bm, 1, Sq, Sk)).reshape(Bm, Sq, Sk).astype(jnp.int8)

    x = scaled_dot_product_attention(
        q_in, k_in, v_in, mask3, n_heads, E, q_col=qc, k_col=kc, v_col=vc
    )                                                                  # [B, Sq, E]
    out = linear_no_bias(x.reshape(B * Sq, E), w_o).reshape(B, Sq, E)
    return out


# ---------------------------------------------------------------------------
# Pure-JAX reference (HIGHEST precision) matching the PyTorch forward.
# ---------------------------------------------------------------------------
def _reference(query, key, value, mask, w_q, w_k, w_v, w_o, n_heads):
    P = jax.lax.Precision.HIGHEST
    B, Sq, E = query.shape
    Sk = key.shape[1]
    Dh = E // n_heads
    qp = jnp.einsum("bse,oe->bso", query, w_q, precision=P)
    kp = jnp.einsum("bse,oe->bso", key, w_k, precision=P)
    vp = jnp.einsum("bse,oe->bso", value, w_v, precision=P)
    qp = qp.reshape(B, Sq, n_heads, Dh).transpose(0, 2, 1, 3)
    kp = kp.reshape(B, Sk, n_heads, Dh).transpose(0, 2, 1, 3)
    vp = vp.reshape(B, Sk, n_heads, Dh).transpose(0, 2, 1, 3)
    scores = jnp.einsum("bhqd,bhkd->bhqk", qp, kp, precision=P) / math.sqrt(Dh)
    if mask is not None:
        scores = jnp.where(mask == 0, _NEG_INF, scores)
    attn = jax.nn.softmax(scores, axis=-1)
    x = jnp.einsum("bhqk,bhkd->bhqd", attn, vp, precision=P)
    x = x.transpose(0, 2, 1, 3).reshape(B, Sq, E)
    return jnp.einsum("bse,oe->bso", x, w_o, precision=P)


def _check(out, ref, tag):
    max_err = float(jnp.max(jnp.abs(out - ref)))
    rel_err = float(jnp.linalg.norm(out - ref) / jnp.linalg.norm(ref))
    assert max_err < 5e-2 and rel_err < 2e-2, (tag, max_err, rel_err)


if __name__ == "__main__":
    batch, seq_len, embed_dim, n_heads = 2, 8, 128, 4
    key0 = jax.random.PRNGKey(0)
    k1, k2, k4, k5, k6, k7 = jax.random.split(key0, 6)
    w_scale = 1.0 / math.sqrt(embed_dim)

    x_in = jax.random.normal(k1, (batch, seq_len, embed_dim), dtype=jnp.float32)
    q_alt = jax.random.normal(k2, (batch, seq_len, embed_dim), dtype=jnp.float32)
    w_q = jax.random.normal(k4, (embed_dim, embed_dim), dtype=jnp.float32) * w_scale
    w_k = jax.random.normal(k5, (embed_dim, embed_dim), dtype=jnp.float32) * w_scale
    w_v = jax.random.normal(k6, (embed_dim, embed_dim), dtype=jnp.float32) * w_scale
    w_o = jax.random.normal(k7, (embed_dim, embed_dim), dtype=jnp.float32) * w_scale

    # 1) Self-attention with a causal mask (fused-QKV projection + masked kernel).
    mask = jnp.tril(jnp.ones((seq_len, seq_len), dtype=jnp.float32))[None, None]
    out = multi_head_attention_block(x_in, x_in, x_in, mask, w_q, w_k, w_v, w_o, n_heads)
    out = jax.block_until_ready(out)
    assert out.shape == (batch, seq_len, embed_dim) and out.dtype == x_in.dtype
    _check(out, _reference(x_in, x_in, x_in, mask, w_q, w_k, w_v, w_o, n_heads), "self")

    # 2) Cross-attention, no mask (fused-KV projection + maskless kernel).
    out2 = multi_head_attention_block(q_alt, x_in, x_in, None, w_q, w_k, w_v, w_o, n_heads)
    out2 = jax.block_until_ready(out2)
    _check(out2, _reference(q_alt, x_in, x_in, None, w_q, w_k, w_v, w_o, n_heads), "cross")

    print("KERNEL_OK")
</pallas_src>

<mosaic_0001>
module attributes {stable_mosaic.version = 11 : i64} {
  func.func @_matmul_kernel_fullk(%arg0: i32, %arg1: i32, %arg2: memref<16x128xf32, #tpu.memory_space<vmem>>, %arg3: memref<128x128xf32, #tpu.memory_space<vmem>>, %arg4: memref<16x128xf32, #tpu.memory_space<vmem>>) attributes {dimension_semantics = [#tpu.dimension_semantics<parallel>, #tpu.dimension_semantics<parallel>], iteration_bounds = array<i64: 1, 3>, scalar_prefetch = 0 : i64, scratch_operands = 0 : i64, tpu.core_type = #tpu.core_type<tc>, window_params = [{transform_indices = @transform_0, window_bounds = array<i64: 16, 128>}, {transform_indices = @transform_1, window_bounds = array<i64: 128, 128>}, {transform_indices = @transform_2, window_bounds = array<i64: 16, 128>}]} {
    %c0 = arith.constant 0 : index
    %c0_0 = arith.constant 0 : index
    %0 = vector.load %arg2[%c0, %c0_0] : memref<16x128xf32, #tpu.memory_space<vmem>>, vector<16x128xf32>
    %c0_1 = arith.constant 0 : index
    %c0_2 = arith.constant 0 : index
    %1 = vector.load %arg3[%c0_1, %c0_2] : memref<128x128xf32, #tpu.memory_space<vmem>>, vector<128x128xf32>
    %cst = arith.constant dense<0.000000e+00> : vector<16x128xf32>
    %2 = tpu.matmul %0, %1, %cst {dimension_numbers = #tpu.dot_dimension_numbers<[1], [1], [0], [0], [0, 0, 1, 0], [], []>} : vector<16x128xf32>, vector<128x128xf32>, vector<16x128xf32> -> vector<16x128xf32>
    %c0_3 = arith.constant 0 : index
    %c0_4 = arith.constant 0 : index
    %3 = vector.load %arg4[%c0_3, %c0_4] : memref<16x128xf32, #tpu.memory_space<vmem>>, vector<16x128xf32>
    tpu.vector_store %arg4[%c0_3, %c0_4], %2 {strides = array<i32>} : memref<16x128xf32, #tpu.memory_space<vmem>>, vector<16x128xf32>,
    return
  }
  func.func @transform_0(%arg0: i32, %arg1: i32) -> (i32, i32) {
    %c0_i32 = arith.constant 0 : i32
    %c0_i32_0 = arith.constant 0 : i32
    return %arg0, %c0_i32 : i32, i32
  }
  func.func @transform_1(%arg0: i32, %arg1: i32) -> (i32, i32) {
    %c0_i32 = arith.constant 0 : i32
    %c0_i32_0 = arith.constant 0 : i32
    return %arg1, %c0_i32 : i32, i32
  }
  func.func @transform_2(%arg0: i32, %arg1: i32) -> (i32, i32) {
    %c0_i32 = arith.constant 0 : i32
    return %arg0, %arg1 : i32, i32
  }
}

</mosaic_0001>

<bundles_post_ra>
// kernel: tpu_custom_call.1
= control target key start
LH: loop header
LB: loop body
LE: loop exit
PB: predicated region body
PF: predicated region fallthrough
CT: control target
= control target key end

     0   :  { %7 = vsyncpa [#allocation3], 0  ;;  %s816_s0 = inlined_call_operand.hbm [shape: f32[16,128], index: 0, kind: input, shape index: {}]   ;;  %s817_s1 = inlined_call_operand.hbm [shape: f32[384,128], index: 1, kind: input, shape index: {}]   ;;  %s818_s2 = inlined_call_operand.hbm [shape: f32[16,384], index: 2, kind: output, shape index: {}]  }
   0x1   :  { %8 = vsyncpa [#allocation6], 0 }
   0x2   :  { %10 = vsyncpa [#allocation6 + $0x1], 0 }
   0x3   :  { %11 = vsyncpa [#allocation4], 0 }
   0x4   :  { %13 = vsyncpa [#allocation4 + $0x1], 0  ;;  %s644_s9 = smov 0   ;;  %s646_s10 = smov 0  }
   0x5   :  { %s648_s11 = smov 0   ;;  %s650_s12 = smov 0  }
   0x6   :  { %s652_s13 = smov 0   ;;  %s654_s14 = smov 0  }
   0x7 LB: > { %s364_s15 = sadd.s32 4294967295, %s621_s14   ;;  %s365_s16 = sadd.s32 4294967294, %s621_s14   ;;  %s621_s14 = sphi %s654_s14, %s19_s14   ;;  %s617_s13 = sphi %s652_s13, %s830_s13   ;;  %s613_s12 = sphi %s650_s12, %s829_s12   ;;  %s609_s11 = sphi %s648_s11, %s828_s11   ;;  %s605_s10 = sphi %s646_s10, %s827_s10   ;;  %s601_s9 = sphi %s644_s9, %s826_s9  }
   0x8   : > { %p77_p0 = scmp.ne.s32.totalorder %s605_s10, %s601_s9  ;;  %p678_p1 = scmp.eq.s32.totalorder %s364_s15, 0 }
   0x9   : > { %p682_p2 = scmp.eq.s32.totalorder %s364_s15, 2  ;;  %p109_p3 = scmp.eq.s32.totalorder %s365_s16, 2 }
   0xa   : > { %p688_p4 = por %p678_p1, %p77_p0  ;;  %p366_p5 = scmp.ge.s32.totalorder %s621_s14, 1 }
   0xb   : > { %p693_p6 = por %p109_p3, %p77_p0  ;;  %p116_p7 = scmp.lt.s32.totalorder %s621_s14, 4 }
   0xc   : > { %s130_s23 = sshll.u32 %s816_s0, 4  ;;  %s623_s25 = smov [#allocation2]   ;;  %s131_s23 = int_to_ptr.hbm [resolvable:$true] %s130_s23 }
   0xd   : > { %p701_p8 = pnand %p366_p5, %p116_p7  ;;  %s132_s26 = sshll.u32 %s623_s25, 4  ;;  %s133_s26 = int_to_ptr.vmem [resolvable:$true] %s132_s26 }
   0xe   : > { %s624_s27 = smov 128   ;;  %s625_s28 = smov 8  }
   0xf   : > { %p405_p9 = pneg %p701_p8  ;;  %s28_s29 = sadd.s32 1, %s617_s13 }
  0x10   : > { %p29_p11 = scmp.ge.s32.totalorder %s28_s29, 3  ;;  %s64_s30 = sadd.s32 1, %s609_s11 }
  0x11   : > { %p406_p10 = pnand %p405_p9, %p678_p1  ;;  %p71_p12 = scmp.ne.s32.totalorder %s609_s11, %s605_s10 }
  0x12   : > { %p72_p13 = scmp.eq.s32.totalorder %s621_s14, 0  ;;  %s832_s29 = smov (%p29_p11, %s28_s29), 0 }
  0x13   : > { %408 = dma.hbm_to_vmem [thread:$0]  (!%p406_p10), %s131_s23, 256, %s133_s26, [#allocation3], %s624_s27, %s624_s27, %s625_s28  }
  0x14   : > { %p719_p0 = por %p72_p13, %p71_p12  ;;  %p725_p3 = por %p682_p2, %p71_p12 }
  0x15   : > { %s61_s5 = ssub.s32 %s617_s13, %s832_s29  ;;  %p418_p5 = scmp.lt.s32.totalorder %s621_s14, 3 }
  0x16   : > { %p62_p7 = scmp.eq.s32.totalorder %s61_s5, 0  ;;  %s146_s6 = sand.u32 1, %s609_s11  }
  0x17   : > { %s369_s7 = sshll.u32 %s146_s6, 7  ;;  %s380_s15 = sshll.u32 %s617_s13, 7 }
  0x18   : > { %s734_s8 = scalar_select %p62_p7, %s609_s11, %s64_s30  }
  0x19   : > { %s155_s22 = scalar_lea.hbm %s817_s1, %s380_s15  ;;  %s150_s23 = scalar_lea.vmem [#allocation5], %s369_s7 }
  0x1a   : > { %s158_s25 = sshll.u32 %s150_s23, 4  ;;  %s156_s18 = sshll.u32 %s155_s22, 4  ;;  %s159_s25 = int_to_ptr.vmem [resolvable:$true] %s158_s25  ;;  %s157_s18 = int_to_ptr.hbm [resolvable:$true] %s156_s18 }
  0x1b   : > { %p410_p2 = pnand %p418_p5, %p719_p0  ;;  %s147_s26 = scalar_lea.sflag [#allocation6], %s146_s6 }
  0x1c   : > { %170 = sbr.rel (%p701_p8) target bundleno = 234 (0xea), region = 28 }
  0x1d   : > { %412 = dma.hbm_to_vmem [thread:$0]  (!%p410_p2), %s157_s18, 2048, %s159_s25, %s147_s26, %s624_s27, %s624_s27, %s625_s28  }
  0x21   : > { %588 = dma.done.wait (%p678_p1), [#allocation3], 256  }
  0x22   : > { %590 = vsyncadd (%p678_p1), [#allocation3], 4294967040  ;;  %s752_s30 = sand.u32 1, %s605_s10  }
  0x23   : > { %s374_s3 = sshll.u32 %s752_s30, 7  ;;  %s178_s5 = scalar_lea.sflag [#allocation6], %s752_s30 }
  0x24   : > { %s756_s6 = scalar_lea.vmem [#allocation5], %s374_s3 }
  0x25   : > { %592 = dma.done.wait (%p688_p4), %s178_s5, 2048  }
  0x26   : > { %594 = vsyncadd (%p688_p4), %s178_s5, 4294965248  ;;  %v223_v0 = vld [vmem:[%s756_s6 + $0x78] sm:$0xff]  ;;  %v222_v1 = vld [vmem:[%s756_s6 + $0x70] sm:$0xff]  ;;  %s375_s17 = sshll.u32 %s752_s30, 4  ;;  %s377_s19 = sshll.u32 %s613_s12, 3 }
  0x27   : > { %224 = vmatpush.xpose.msra.mxu0 %v223_v0  ;;  %381 = vmatpush.xpose.msra.mxu1 %v223_v0  ;;  %v221_v2 = vld [vmem:[%s756_s6 + $0x68] sm:$0xff]  ;;  %v220_v3 = vld [vmem:[%s756_s6 + $0x60] sm:$0xff]  ;;  %v219_v4 = vld [vmem:[%s756_s6 + $0x58] sm:$0xff]  ;;  %s263_s28 = scalar_lea.hbm %s818_s2, %s377_s19  ;;  %s202_s7 = scalar_lea.vmem [#allocation7], %s375_s17 }
  0x28   : > { %v218_v5 = vld [vmem:[%s756_s6 + $0x50] sm:$0xff]  ;;  %v217_v6 = vld [vmem:[%s756_s6 + $0x48] sm:$0xff]  ;;  %v216_v7 = vld [vmem:[%s756_s6 + $0x40] sm:$0xff]  ;;  %s264_s15 = sshll.u32 %s202_s7, 4  ;;  %s266_s16 = sshll.u32 %s263_s28, 4  ;;  %s265_s15 = int_to_ptr.vmem [resolvable:$true] %s264_s15  ;;  %s267_s16 = int_to_ptr.hbm [resolvable:$true] %s266_s16 }
  0x29   : > { %v215_v8 = vld [vmem:[%s756_s6 + $0x38] sm:$0xff]  ;;  %v214_v9 = vld [vmem:[%s756_s6 + $0x30] sm:$0xff]  ;;  %v213_v10 = vld [vmem:[%s756_s6 + $0x28] sm:$0xff]  ;;  %s250_s21 = scalar_lea.sflag [#allocation4], %s752_s30  ;;  %s549_s22 = sshra.s32 %s267_s16, 4  ;;  %s550_s22 = int_to_ptr.hbm [resolvable:$true] %s549_s22 }
  0x2a   : > { %v212_v11 = vld [vmem:[%s756_s6 + $0x20] sm:$0xff]  ;;  %v211_v12 = vld [vmem:[%s756_s6 + $0x18] sm:$0xff]  ;;  %v210_v13 = vld [vmem:[%s756_s6 + $0x10] sm:$0xff]  ;;  %s551_s23 = scalar_lea.hbm %s550_s22, 16  ;;  %s555_s18 = scalar_lea.hbm %s818_s2, 48 }
  0x2b   : > { %225 = vmatpush.xpose.msra.mxu0 %v222_v1  ;;  %382 = vmatpush.xpose.msra.mxu1 %v222_v1  ;;  %v209_v14 = vld [vmem:[%s756_s6 + $0x8] sm:$0xff]  ;;  %v208_v15 = vld [vmem:[%s756_s6] sm:$0xff]  ;;  %v206_v16 = vld [vmem:[#allocation2] sm:$0xff]  ;;  %p552_p1 = scmp.ne.s32.totalorder %s550_s22, %s551_s23  ;;  %p556_p9 = scmp.lt.s32.totalorder %s550_s22, %s818_s2 }
  0x2c   : > { %v207_v17 = vld [vmem:[#allocation2 + $0x8] sm:$0xff]  ;;  %p557_p10 = scmp.lt.s32.totalorder %s555_s18, %s551_s23 }
  0x2d   : > { %p553_p4 = pnand %p552_p1, %p725_p3 }
  0x2e   : > { %p558_p11 = por %p557_p10, %p556_p9 }
  0x2f   : > { %226 = vmatpush.xpose.msra.mxu0 %v221_v2  ;;  %383 = vmatpush.xpose.msra.mxu1 %v221_v2  ;;  %p554_p8 = pneg %p553_p4 }
  0x31   : > { %p559_p12 = pnand %p558_p11, %p554_p8 }
  0x33   : > { %227 = vmatpush.xpose.msra.mxu0 %v220_v3  ;;  %384 = vmatpush.xpose.msra.mxu1 %v220_v3 }
  0x37   : > { %228 = vmatpush.xpose.msra.mxu0 %v219_v4  ;;  %385 = vmatpush.xpose.msra.mxu1 %v219_v4 }
  0x3b   : > { %229 = vmatpush.xpose.msra.mxu0 %v218_v5  ;;  %386 = vmatpush.xpose.msra.mxu1 %v218_v5 }
  0x3f   : > { %230 = vmatpush.xpose.msra.mxu0 %v217_v6  ;;  %387 = vmatpush.xpose.msra.mxu1 %v217_v6 }
  0x43   : > { %231 = vmatpush.xpose.msra.mxu0 %v216_v7  ;;  %388 = vmatpush.xpose.msra.mxu1 %v216_v7 }
  0x47   : > { %232 = vmatpush.xpose.msra.mxu0 %v215_v8  ;;  %389 = vmatpush.xpose.msra.mxu1 %v215_v8 }
  0x4b   : > { %233 = vmatpush.xpose.msra.mxu0 %v214_v9  ;;  %390 = vmatpush.xpose.msra.mxu1 %v214_v9 }
  0x4f   : > { %234 = vmatpush.xpose.msra.mxu0 %v213_v10  ;;  %391 = vmatpush.xpose.msra.mxu1 %v213_v10 }
  0x53   : > { %235 = vmatpush.xpose.msra.mxu0 %v212_v11  ;;  %392 = vmatpush.xpose.msra.mxu1 %v212_v11 }
  0x57   : > { %236 = vmatpush.xpose.msra.mxu0 %v211_v12  ;;  %393 = vmatpush.xpose.msra.mxu1 %v211_v12 }
  0x5b   : > { %237 = vmatpush.xpose.msra.mxu0 %v210_v13  ;;  %394 = vmatpush.xpose.msra.mxu1 %v210_v13 }
  0x5f   : > { %238 = vmatpush.xpose.msra.mxu0 %v209_v14  ;;  %395 = vmatpush.xpose.msra.mxu1 %v209_v14 }
  0x63   : > { %239 = vmatpush.xpose.msra.mxu0 %v208_v15  ;;  %396 = vmatpush.xpose.msra.mxu1 %v208_v15 }
  0x66   : > { %240 = vmatmul.f32.vlgmr.msra.gmra.mxu0 %v206_v16  ;;  %243 = vmatmul.f32.vlgmr.msra.gmra.mxu1 %v207_v17 }
  0xe3   : > { %v241_v18 = vpop.f32.mrf.mxu0  ;;  %v244_v19 = vpop.f32.mrf.mxu1 }
  0xe4   : > { %247 = vst [vmem:[%s202_s7] sm:$0xff] %v241_v18 }
  0xe5   : > { %248 = vst [vmem:[%s202_s7 + $0x8] sm:$0xff] %v244_v19 }
  0xe6   : > { %562 = shalt.err (!%p559_p12)
}
  0xe7   : > { %s626_s30 = smov 128   ;;  %s627_s5 = smov 384  }
  0xe8   : > { %s628_s6 = smov 8  }
  0xe9   : > { %403 = dma.vmem_to_hbm [thread:$0]  (%p725_p3), %s265_s15, 256, %s267_s16, %s250_s21, %s626_s30, %s627_s5, %s628_s6  }
  0xea PF: > { %p420_p13 = scmp.ge.s32.totalorder %s621_s14, 2  ;;  %s281_s17 = sand.u32 1, %s601_s9  }
  0xeb   : > { %s282_s19 = scalar_lea.sflag [#allocation4], %s281_s17 }
  0xec   : > { %p414_p0 = pnand %p420_p13, %p693_p6 }
  0xee   : > { %p415_p5 = pneg %p414_p0 }
  0xf0   : > { %596 = dma.done.wait (%p415_p5), %s282_s19, 256  }
  0xf1   : > { %598 = vsyncadd (%p415_p5), %s282_s19, 4294967040  ;;  %s19_s14 = sadd.s32 1, %s621_s14   ;;  %s826_s9 = smov %s605_s10 }
  0xf2   : > { %p16_p7 = scmp.ge.s32.totalorder %s19_s14, 5   ;;  %s827_s10 = smov %s609_s11 }
  0xf3   : > { %s828_s11 = smov %s734_s8  ;;  %s829_s12 = smov %s617_s13 }
  0xf4   : > { %s830_s13 = smov %s832_s29  ;;  %18 = sbr.rel (!%p16_p7) target bundleno = 7 (0x7), region = 79 }
  0xf9   :  { %288 = vsyncpa [#allocation3], 1 }
  0xfa   :  { %290 = vsyncpa [#allocation3 + $0x1], 1 }
  0xfb   :  { %291 = vsyncpa [#allocation6], 1 }
  0xfc   :  { %293 = vsyncpa [#allocation6 + $0x1], 1 }
  0xfd   :  { %294 = vsyncpa [#allocation4], 1 }
  0xfe   :  { %296 = vsyncpa [#allocation4 + $0x1], 1 }

</bundles_post_ra>
